<compile_context>
chip_gen: v7x
topology: tpu7x:2x2x1
jax: 0.10.0
libtpu: 0.0.40
codegen_flags: <defaults>
</compile_context>

<pallas_src>
import jax
import jax.numpy as jnp
from jax.experimental import pallas as pl
from jax.experimental.pallas import tpu as pltpu


def _round_up(x, m):
    return (x + m - 1) // m * m


def _vmem_capacity_bytes():
    """Physical VMEM per core; conservative fallback (v7x = 64 MiB)."""
    try:
        info = pltpu.get_tpu_info()
        cap = getattr(info, "vmem_capacity_bytes", None)
        if cap:
            return int(cap)
    except Exception:
        pass
    return 64 * 1024 * 1024


def classblock_kernel(x_ref, w1_ref, b1_ref, w2_ref, b2_ref, out_ref, h_ref):
    # TODO(synk): train-mode Dropout / batch-statistic BatchNorm not implemented
    # (inference path: Dropout is identity, BN uses running statistics).
    @pl.when(pl.program_id(1) == 0)
    def _():
        # First Linear (BN folded into W1/b1): bf16 MXU, f32 accumulation.
        xb = x_ref[...].astype(w1_ref.dtype)          # in-kernel f32 -> bf16
        h = jnp.dot(xb, w1_ref[...], preferred_element_type=jnp.float32)
        h_ref[...] = (h + b1_ref[...]).astype(h_ref.dtype)

    # Classifier Linear on the (possibly C-tiled) class axis.
    out = jnp.dot(h_ref[...], w2_ref[...], preferred_element_type=jnp.float32)
    out_ref[...] = (out + b2_ref[...]).astype(out_ref.dtype)


def init_params(key, input_dim, num_bottleneck, class_num):
    """Raw parameters mirroring weights_init_kaiming / weights_init_classifier."""
    k1, k2, k3 = jax.random.split(key, 3)

    # add_block Linear: kaiming_normal_, a=0, mode='fan_out' -> std = sqrt(2/out)
    std1 = (2.0 / num_bottleneck) ** 0.5
    w1 = std1 * jax.random.normal(k1, (num_bottleneck, input_dim), jnp.float32)
    b1 = jnp.zeros((num_bottleneck,), jnp.float32)

    # BatchNorm1d: weight ~ N(1.0, 0.02), bias = 0, running stats (0, 1).
    gamma = 1.0 + 0.02 * jax.random.normal(k2, (num_bottleneck,), jnp.float32)
    beta = jnp.zeros((num_bottleneck,), jnp.float32)
    running_mean = jnp.zeros((num_bottleneck,), jnp.float32)
    running_var = jnp.ones((num_bottleneck,), jnp.float32)

    # classifier Linear: weight ~ N(0, 0.001), bias = 0.
    w2 = 0.001 * jax.random.normal(k3, (class_num, num_bottleneck), jnp.float32)
    b2 = jnp.zeros((class_num,), jnp.float32)

    return {
        "w1": w1.T,                 # (D, H) = W1^T (row-major matmul layout)
        "b1": b1,                   # (H,)
        "gamma": gamma, "beta": beta,
        "running_mean": running_mean, "running_var": running_var,
        "w2": w2.T,                 # (H, C) = W2^T
        "b2": b2,                   # (C,)
    }


def fold_and_pad_params(raw, eps=1e-5, compute_dtype=jnp.bfloat16):
    """Fold eval-mode BN into the first Linear, pad feature dims to 128-lane
    multiples, and cast weights to the MXU compute dtype (fold done in f32)."""
    w1, b1 = raw["w1"], raw["b1"]
    w2, b2 = raw["w2"], raw["b2"]
    D, H = w1.shape
    C = w2.shape[1]

    bn_s = raw["gamma"] / jnp.sqrt(raw["running_var"] + eps)        # (H,)
    bn_t = raw["beta"] - raw["running_mean"] * bn_s                 # (H,)
    w1_f = w1 * bn_s[None, :]                                       # column scale
    b1_f = b1 * bn_s + bn_t

    D_pad = _round_up(D, 128)
    H_pad = _round_up(H, 128)
    C_pad = _round_up(C, 128)

    w1_p = jnp.zeros((D_pad, H_pad), compute_dtype).at[:D, :H].set(
        w1_f.astype(compute_dtype))
    b1_p = jnp.zeros((1, H_pad), jnp.float32).at[0, :H].set(b1_f)
    w2_p = jnp.zeros((H_pad, C_pad), compute_dtype).at[:H, :C].set(
        w2.astype(compute_dtype))
    b2_p = jnp.zeros((1, C_pad), jnp.float32).at[0, :C].set(b2)

    return {"w1": w1_p, "b1": b1_p, "w2": w2_p, "b2": b2_p, "dims": (D, H, C)}


def class_block_forward(x, params, *, block_b=256, block_c=1024,
                        compute_dtype=jnp.bfloat16):
    """x: (B, input_dim) float32 -> (B, class_num) float32 logits."""
    D, H, C = params["dims"]
    w1, b1, w2, b2 = params["w1"], params["b1"], params["w2"], params["b2"]
    D_pad, H_pad = w1.shape
    C_pad = w2.shape[1]

    B = x.shape[0]
    TB = min(block_b, _round_up(B, 16))           # batch tile (sublane-friendly)
    B_pad = _round_up(B, TB)
    n_b = B_pad // TB

    # Class-axis tile: largest 128-multiple divisor of C_pad not above block_c
    # (TC == C_pad -> no class tiling, W2 fully resident).
    TC = C_pad
    if C_pad > block_c:
        for cand in range(_round_up(block_c, 128), 0, -128):
            if C_pad % cand == 0:
                TC = cand
                break
    n_c = C_pad // TC

    # Only materialize a padded copy of x when padding is actually required
    # (avoids a full extra HBM round trip in the aligned case).  x stays f32;
    # the bf16 cast happens in-kernel.
    if B_pad == B and D_pad == D:
        x_in = x
    else:
        x_in = jnp.zeros((B_pad, D_pad), x.dtype).at[:B, :D].set(x)

    # Constant-index blocks: single VMEM buffer (no dead double buffering).
    def resident(shape, imap):
        return pl.BlockSpec(shape, imap, pipeline_mode=pl.Buffered(1))

    x_ctor = resident if n_b == 1 else pl.BlockSpec
    w2_ctor = pl.BlockSpec if n_c > 1 else resident

    in_specs = [
        x_ctor((TB, D_pad), lambda i, j: (i, 0)),        # x: pipelined over i
        resident((D_pad, H_pad), lambda i, j: (0, 0)),   # W1: VMEM-resident
        resident((1, H_pad), lambda i, j: (0, 0)),       # folded bias1
        w2_ctor((H_pad, TC), lambda i, j: (0, j)),       # W2: resident / C-streamed
        w2_ctor((1, TC), lambda i, j: (0, j)),           # bias2
    ]
    out_spec = pl.BlockSpec((TB, TC), lambda i, j: (i, j))

    # Explicit VMEM budget: resident weights + double-buffered x/out tiles +
    # h scratch, with headroom, capped below physical VMEM (v7x = 64 MiB).
    itemsize_w = jnp.dtype(compute_dtype).itemsize
    needed = (2 * TB * D_pad * 4                              # x tiles (f32)
              + 2 * TB * TC * 4                               # out tiles (f32)
              + D_pad * H_pad * itemsize_w                    # W1 (1 buffer)
              + (2 if n_c > 1 else 1) * H_pad * TC * itemsize_w   # W2
              + 8 * H_pad * 4 + 8 * TC * 4                    # biases (padded)
              + TB * H_pad * itemsize_w)                      # h scratch
    vmem_limit = int(min(max(needed * 3 // 2 + (2 << 20), 32 << 20),
                         _vmem_capacity_bytes() * 3 // 4))

    # Megacore split on batch only when the duplicated weight DMA is amortized.
    batch_sem = "parallel" if n_b > 2 else "arbitrary"

    cost = pl.CostEstimate(
        flops=2 * B_pad * (D_pad * H_pad + H_pad * C_pad),
        transcendentals=0,
        bytes_accessed=(B_pad * D_pad * 4
                        + w1.size * w1.dtype.itemsize
                        + w2.size * w2.dtype.itemsize
                        + b1.size * 4 + b2.size * 4
                        + B_pad * C_pad * 4),
    )

    out = pl.pallas_call(
        classblock_kernel,
        out_shape=jax.ShapeDtypeStruct((B_pad, C_pad), jnp.float32),
        grid=(n_b, n_c),
        in_specs=in_specs,
        out_specs=out_spec,
        scratch_shapes=[pltpu.VMEM((TB, H_pad), compute_dtype)],
        compiler_params=pltpu.CompilerParams(
            dimension_semantics=(batch_sem, "arbitrary"),
            vmem_limit_bytes=vmem_limit,
        ),
        cost_estimate=cost,
    )(x_in, w1, b1, w2, b2)

    # TODO(synk): cross-call prefetch of W1/W2 (semaphore + VMEM outputs) would
    # hide the one-shot weight DMA behind the backbone tail for tiny batches.
    # TODO(synk): ClassBlock(return_f=True) would additionally require exposing
    # the bottleneck feature h; ft_net_IR uses the logits-only default.
    return out[:B, :C]


if __name__ == "__main__":
    key = jax.random.PRNGKey(0)
    kx, kp = jax.random.split(key)

    # Small shapes consistent with ClassBlock(input_dim, class_num, droprate=0.5,
    # num_bottleneck): batch=32, input_dim=256, bottleneck=128, classes=256.
    B, D, H, C = 32, 256, 128, 256

    raw = init_params(kp, input_dim=D, num_bottleneck=H, class_num=C)
    params = fold_and_pad_params(raw)

    x = jax.random.normal(kx, (B, D), jnp.float32)

    # block_b=16 -> 2 batch tiles; block_c=128 -> 2 class tiles: exercises both
    # the resident-weight path (W1/b1) and the C-streamed h-scratch path.
    out = class_block_forward(x, params, block_b=16, block_c=128)
    out = jax.block_until_ready(out)
    assert out.shape == (B, C)

    # Reference: same bf16 quantization of weights/activations, f32 math.
    w1f = params["w1"][:D, :H].astype(jnp.float32)
    w2f = params["w2"][:H, :C].astype(jnp.float32)
    b1f = params["b1"][:, :H]
    b2f = params["b2"][:, :C]
    xb = x.astype(jnp.bfloat16).astype(jnp.float32)
    h_ref = xb @ w1f + b1f
    h_ref = h_ref.astype(jnp.bfloat16).astype(jnp.float32)
    ref = h_ref @ w2f + b2f

    assert jnp.allclose(out, ref, atol=3e-3, rtol=5e-2), (
        float(jnp.max(jnp.abs(out - ref))))

    print("KERNEL_OK")
</pallas_src>

<mosaic_0001>
module attributes {stable_mosaic.version = 11 : i64} {
  func.func @classblock_kernel(%arg0: i32, %arg1: i32, %arg2: memref<16x256xf32, #tpu.memory_space<vmem>>, %arg3: memref<256x128xbf16, #tpu.memory_space<vmem>>, %arg4: memref<1x128xf32, #tpu.memory_space<vmem>>, %arg5: memref<128x128xbf16, #tpu.memory_space<vmem>>, %arg6: memref<1x128xf32, #tpu.memory_space<vmem>>, %arg7: memref<16x128xf32, #tpu.memory_space<vmem>>, %arg8: memref<16x128xbf16, #tpu.memory_space<vmem>>) attributes {dimension_semantics = [#tpu.dimension_semantics<arbitrary>, #tpu.dimension_semantics<arbitrary>], iteration_bounds = array<i64: 2, 2>, scalar_prefetch = 0 : i64, scratch_operands = 1 : i64, tpu.core_type = #tpu.core_type<tc>, window_params = [{transform_indices = @transform_0, window_bounds = array<i64: 16, 256>}, {pipeline_mode = #tpu.pipeline_mode<synchronous>, transform_indices = @transform_1, window_bounds = array<i64: 256, 128>}, {pipeline_mode = #tpu.pipeline_mode<synchronous>, transform_indices = @transform_2, window_bounds = array<i64: 1, 128>}, {transform_indices = @transform_3, window_bounds = array<i64: 128, 128>}, {transform_indices = @transform_4, window_bounds = array<i64: 1, 128>}, {transform_indices = @transform_5, window_bounds = array<i64: 16, 128>}]} {
    %c0_i32 = arith.constant 0 : i32
    %0 = arith.cmpi eq, %arg1, %c0_i32 : i32
    %1 = arith.extui %0 : i1 to i32
    %c0_i32_0 = arith.constant 0 : i32
    %2 = arith.cmpi ne, %1, %c0_i32_0 : i32
    scf.if %2 {
      %c0_8 = arith.constant 0 : index
      %c0_9 = arith.constant 0 : index
      %10 = vector.load %arg2[%c0_8, %c0_9] : memref<16x256xf32, #tpu.memory_space<vmem>>, vector<16x256xf32>
      %11 = arith.truncf %10 : vector<16x256xf32> to vector<16x256xbf16>
      %c0_10 = arith.constant 0 : index
      %c0_11 = arith.constant 0 : index
      %12 = vector.load %arg3[%c0_10, %c0_11] : memref<256x128xbf16, #tpu.memory_space<vmem>>, vector<256x128xbf16>
      %cst_12 = arith.constant dense<0.000000e+00> : vector<16x128xf32>
      %13 = tpu.matmul %11, %12, %cst_12 {dimension_numbers = #tpu.dot_dimension_numbers<[1], [0], [0], [1], [0, 0, 1, 1], [], []>} : vector<16x256xbf16>, vector<256x128xbf16>, vector<16x128xf32> -> vector<16x128xf32>
      %c0_13 = arith.constant 0 : index
      %c0_14 = arith.constant 0 : index
      %14 = vector.load %arg4[%c0_13, %c0_14] : memref<1x128xf32, #tpu.memory_space<vmem>>, vector<1x128xf32>
      %15 = vector.broadcast %14 : vector<1x128xf32> to vector<16x128xf32>
      %16 = arith.addf %13, %15 : vector<16x128xf32>
      %17 = arith.truncf %16 : vector<16x128xf32> to vector<16x128xbf16>
      %c0_15 = arith.constant 0 : index
      %c0_16 = arith.constant 0 : index
      %18 = vector.load %arg8[%c0_15, %c0_16] : memref<16x128xbf16, #tpu.memory_space<vmem>>, vector<16x128xbf16>
      tpu.vector_store %arg8[%c0_15, %c0_16], %17 {strides = array<i32>} : memref<16x128xbf16, #tpu.memory_space<vmem>>, vector<16x128xbf16>,
    } else {
    }
    %c0 = arith.constant 0 : index
    %c0_1 = arith.constant 0 : index
    %3 = vector.load %arg8[%c0, %c0_1] : memref<16x128xbf16, #tpu.memory_space<vmem>>, vector<16x128xbf16>
    %c0_2 = arith.constant 0 : index
    %c0_3 = arith.constant 0 : index
    %4 = vector.load %arg5[%c0_2, %c0_3] : memref<128x128xbf16, #tpu.memory_space<vmem>>, vector<128x128xbf16>
    %cst = arith.constant dense<0.000000e+00> : vector<16x128xf32>
    %5 = tpu.matmul %3, %4, %cst {dimension_numbers = #tpu.dot_dimension_numbers<[1], [0], [0], [1], [0, 0, 1, 1], [], []>} : vector<16x128xbf16>, vector<128x128xbf16>, vector<16x128xf32> -> vector<16x128xf32>
    %c0_4 = arith.constant 0 : index
    %c0_5 = arith.constant 0 : index
    %6 = vector.load %arg6[%c0_4, %c0_5] : memref<1x128xf32, #tpu.memory_space<vmem>>, vector<1x128xf32>
    %7 = vector.broadcast %6 : vector<1x128xf32> to vector<16x128xf32>
    %8 = arith.addf %5, %7 : vector<16x128xf32>
    %c0_6 = arith.constant 0 : index
    %c0_7 = arith.constant 0 : index
    %9 = vector.load %arg7[%c0_6, %c0_7] : memref<16x128xf32, #tpu.memory_space<vmem>>, vector<16x128xf32>
    tpu.vector_store %arg7[%c0_6, %c0_7], %8 {strides = array<i32>} : memref<16x128xf32, #tpu.memory_space<vmem>>, vector<16x128xf32>,
    return
  }
  func.func @transform_0(%arg0: i32, %arg1: i32) -> (i32, i32) {
    %c0_i32 = arith.constant 0 : i32
    %c0_i32_0 = arith.constant 0 : i32
    return %arg0, %c0_i32 : i32, i32
  }
  func.func @transform_1(%arg0: i32, %arg1: i32) -> (i32, i32) {
    %c0_i32 = arith.constant 0 : i32
    %c0_i32_0 = arith.constant 0 : i32
    %c0_i32_1 = arith.constant 0 : i32
    return %c0_i32, %c0_i32_0 : i32, i32
  }
  func.func @transform_2(%arg0: i32, %arg1: i32) -> (i32, i32) {
    %c0_i32 = arith.constant 0 : i32
    %c0_i32_0 = arith.constant 0 : i32
    %c0_i32_1 = arith.constant 0 : i32
    return %c0_i32, %c0_i32_0 : i32, i32
  }
  func.func @transform_3(%arg0: i32, %arg1: i32) -> (i32, i32) {
    %c0_i32 = arith.constant 0 : i32
    %c0_i32_0 = arith.constant 0 : i32
    return %c0_i32, %arg1 : i32, i32
  }
  func.func @transform_4(%arg0: i32, %arg1: i32) -> (i32, i32) {
    %c0_i32 = arith.constant 0 : i32
    %c0_i32_0 = arith.constant 0 : i32
    return %c0_i32, %arg1 : i32, i32
  }
  func.func @transform_5(%arg0: i32, %arg1: i32) -> (i32, i32) {
    %c0_i32 = arith.constant 0 : i32
    return %arg0, %arg1 : i32, i32
  }
}

</mosaic_0001>

<bundles_post_ra>
// kernel: tpu_custom_call.1
= control target key start
LH: loop header
LB: loop body
LE: loop exit
PB: predicated region body
PF: predicated region fallthrough
CT: control target
= control target key end

     0   :  { %s1764_s0 = inlined_call_operand.hbm [shape: f32[32,256], index: 0, kind: input, shape index: {}]   ;;  %s1765_s1 = inlined_call_operand.hbm [shape: bf16[256,128], index: 1, kind: input, shape index: {}]   ;;  %s1766_s2 = inlined_call_operand.vmem [shape: f32[1,128], index: 2, kind: input, shape index: {}]   ;;  %s1767_s3 = inlined_call_operand.hbm [shape: bf16[128,256], index: 3, kind: input, shape index: {}]   ;;  %s1768_s4 = inlined_call_operand.vmem [shape: f32[1,256], index: 4, kind: input, shape index: {}]   ;;  %s1769_s5 = inlined_call_operand.hbm [shape: f32[32,256], index: 5, kind: output, shape index: {}]  }
   0x1   :  { %1787 = sst [smem:[#allocation24_spill]] %s1764_s0 }
   0x2   :  { %1788 = sst [smem:[#allocation25_spill]] %s1766_s2 }
   0x3   :  { %1789 = sst [smem:[#allocation26_spill]] %s1767_s3 }
   0x4   :  { %1790 = sst [smem:[#allocation27_spill]] %s1768_s4 }
   0x5   :  { %1791 = sst [smem:[#allocation28_spill]] %s1769_s5 }
   0x6   :  { %10 = vsyncpa [#allocation4], 0 }
   0x7   :  { %12 = vsyncpa [#allocation4 + $0x1], 0 }
   0x8   :  { %13 = vsyncpa [#allocation7], 0 }
   0x9   :  { %14 = vsyncpa [#allocation5], 0 }
   0xa   :  { %16 = vsyncpa [#allocation5 + $0x1], 0  ;;  %s1337_s18 = smov 0   ;;  %s1339_s19 = smov 0  }
   0xb   :  { %s1341_s20 = smov 0   ;;  %s1343_s21 = smov 0  }
   0xc   :  { %s1345_s22 = smov 0   ;;  %s1347_s23 = smov 0  }
   0xd   :  { %s1349_s24 = smov 0   ;;  %s1351_s25 = smov 0  }
   0xe   :  { %s1353_s26 = smov 0   ;;  %s1355_s27 = smov 0  }
   0xf   :  { %s1357_s28 = smov 0   ;;  %s1359_s29 = smov 0  }
  0x10   :  { %s1361_s30 = smov 0   ;;  %s1363_s6 = smov 0  }
  0x11 LB: > { %1792 = sst [smem:[#allocation14_spill]] %s1259_s23  ;;  %s31_s7 = sadd.s32 1, %s1283_s29  ;;  %s1291_s6 = sphi %s1363_s6, %s22_s6   ;;  %s1287_s30 = sphi %s1361_s30, %s1849_s30   ;;  %s1283_s29 = sphi %s1359_s29, %s1839_s29   ;;  %s1279_s28 = sphi %s1357_s28, %s1838_s28   ;;  %s1275_s27 = sphi %s1355_s27, %s1837_s27   ;;  %s1271_s26 = sphi %s1353_s26, %s1836_s26   ;;  %s1267_s25 = sphi %s1351_s25, %s1848_s25   ;;  %s1263_s24 = sphi %s1349_s24, %s1847_s24   ;;  %s1259_s23 = sphi %s1347_s23, %s1834_s23   ;;  %s1255_s22 = sphi %s1345_s22, %s1846_s22   ;;  %s1251_s21 = sphi %s1343_s21, %s1845_s21   ;;  %s1247_s20 = sphi %s1341_s20, %s1844_s20   ;;  %s1243_s19 = sphi %s1339_s19, %s1843_s19   ;;  %s1239_s18 = sphi %s1337_s18, %s1842_s18  }
  0x12   : > { %1793 = sst [smem:[#allocation15_spill]] %s1271_s26  ;;  %s34_s8 = sadd.s32 1, %s1287_s30 }
  0x13   : > { %1794 = sst [smem:[#allocation16_spill]] %s1275_s27  ;;  %p32_p0 = scmp.ge.s32.totalorder %s31_s7, 2 }
  0x14   : > { %1795 = sst [smem:[#allocation17_spill]] %s1279_s28  ;;  %s41_s9 = sadd.s32 1, %s1271_s26 }
  0x15   : > { %1796 = sst [smem:[#allocation18_spill]] %s1283_s29  ;;  %p48_p1 = scmp.ne.s32.totalorder %s1271_s26, %s1267_s25 }
  0x16   : > { %1797 = sst [smem:[#allocation19_spill]] %s1287_s30  ;;  %p1776_p2 = scmp.eq.s32.totalorder %s1291_s6, 0 }
  0x17   : > { %s1851_s7 = smov (%p32_p0, %s31_s7), 0  ;;  %s1853_s8 = smov (!%p32_p0, %s34_s8), %s1287_s30 }
  0x18   : > { %1798 = sst [smem:[#allocation20_spill]] %s1851_s7  ;;  %p1418_p3 = por %p1776_p2, %p48_p1 }
  0x19   : > { %s1424_s11 = ssub.s32 %s1283_s29, %s1851_s7  ;;  %p36_p4 = scmp.ge.s32.totalorder %s1853_s8, 2 }
  0x1a   : > { %p107_p5 = scmp.eq.s32.totalorder %s1424_s11, 0  ;;  %s163_s12 = sadd.s32 1, %s1247_s20 }
  0x1b   : > { %s1855_s8 = smov (%p36_p4, %s1853_s8), 0  ;;  %p1775_p6 = scmp.lt.s32.totalorder %s1291_s6, 4 }
  0x1c   : > { %1800 = sst [smem:[#allocation21_spill]] %s1855_s8  ;;  %s216_s13 = sand.u32 1, %s1291_s6  }
  0x1d   : > { %s38_s14 = ssub.s32 %s1287_s30, %s1855_s8  ;;  %s218_s16 = sand.u32 1, %s1271_s26  }
  0x1e   : > { %p39_p7 = scmp.eq.s32.totalorder %s38_s14, 0  ;;  %s160_s15 = sor.u32 %s1424_s11, %s38_s14 }
  0x1f   : > { %p161_p8 = scmp.eq.s32.totalorder %s160_s15, 0  ;;  %s775_s5 = sshll.u32 %s218_s16, 5 }
  0x20   : > { %s1437_s17 = scalar_select %p39_p7, %s1271_s26, %s41_s9  }
  0x21   : > { %s1440_s7 = scalar_select %p161_p8, %s1247_s20, %s163_s12  }
  0x22   : > { %1801 = sst [smem:[#allocation22_spill]] %s1437_s17  ;;  %s820_s28 = sshll.u32 %s1287_s30, 9 }
  0x23   : > { %s1802_s0 = sld [smem:[#allocation24_spill]]  ;;  %s220_s8 = scalar_lea.vmem [#allocation3], %s775_s5 }
  0x24   : > { %s228_s3 = sshll.u32 %s220_s8, 4  ;;  %p1452_p9 = pnand %p1775_p6, %p1418_p3  ;;  %s1456_s3 = int_to_ptr.vmem [resolvable:$true] %s228_s3 }
  0x25   : > { %s1458_s12 = scalar_lea.sflag [#allocation4], %s216_s13 }
  0x26   : > { %p1051_p11 = pneg %p1452_p9 }
  0x29   : > { %s1446_s27 = scalar_lea.hbm %s1802_s0, %s820_s28  ;;  %s1054_s28 = scalar_lea.hbm %s1802_s0, 1024 }
  0x2a   : > { %s1049_s2 = scalar_lea.hbm %s1446_s27, 512  ;;  %p1055_p0 = scmp.lt.u32.totalorder %s1446_s27, %s1802_s0 }
  0x2b   : > { %p1050_p10 = scmp.ne.s32.totalorder %s1446_s27, %s1049_s2  ;;  %p1056_p1 = scmp.lt.u32.totalorder %s1054_s28, %s1049_s2 }
  0x2c   : > { %p1058_p4 = scmp.lt.u32.totalorder %s1049_s2, %s1446_s27 }
  0x2d   : > { %p1052_p12 = pnand %p1051_p11, %p1050_p10  ;;  %p1057_p3 = por %p1056_p1, %p1055_p0 }
  0x2f   : > { %p1053_p13 = pneg %p1052_p12  ;;  %p1059_p7 = por %p1058_p4, %p1057_p3 }
  0x31   : > { %p1060_p8 = pnand %p1059_p7, %p1053_p13 }
  0x33   : > { %1063 = shalt.err (!%p1060_p8)
}
  0x34   : > { %s1064_s13 = scalar_lea.vmem %s1456_s3, 512  ;;  %s1293_s14 = smov [#allocation3]  }
  0x35   : > { %p1065_p10 = scmp.ne.s32.totalorder %s1456_s3, %s1064_s13  ;;  %s1069_s15 = sshll.u32 %s1293_s14, 4  ;;  %s1070_s15 = int_to_ptr.vmem [resolvable:$false] %s1069_s15 }
  0x36   : > { %s1071_s16 = scalar_lea.vmem %s1070_s15, 1024  ;;  %p1072_p2 = scmp.lt.s32.totalorder %s1456_s3, %s1070_s15 }
  0x37   : > { %p1067_p12 = pnand %p1065_p10, %p1051_p11  ;;  %p1073_p0 = scmp.lt.s32.totalorder %s1071_s16, %s1064_s13 }
  0x39   : > { %p1068_p6 = pneg %p1067_p12  ;;  %p1074_p1 = por %p1073_p0, %p1072_p2 }
  0x3b   : > { %p1075_p3 = pnand %p1074_p1, %p1068_p6 }
  0x3d   : > { %1078 = shalt.err (!%p1075_p3)
}
  0x3e   : > { %s1294_s2 = smov 256   ;;  %s1295_s4 = smov 16  }
  0x3f   : > { %890 = dma.hbm_to_vmem [thread:$0]  (!%p1452_p9), %s1446_s27, 512, %s1456_s3, %s1458_s12, %s1294_s2, %s1294_s2, %s1295_s4  }
  0x40   : > { %s1487_s5 = sadd.s32 4294967295, %s1291_s6   ;;  %s771_s28 = sadd.s32 4294967294, %s1291_s6  }
  0x41   : > { %p54_p2 = scmp.ne.s32.totalorder %s1267_s25, %s1263_s24  ;;  %p1779_p6 = scmp.eq.s32.totalorder %s1487_s5, 0 }
  0x42   : > { %s109_s8 = sadd.s32 1, %s1259_s23  ;;  %p116_p11 = scmp.ne.s32.totalorder %s1259_s23, %s1255_s22 }
  0x43   : > { %p1498_p13 = por %p1779_p6, %p54_p2  ;;  %p122_p4 = scmp.ne.s32.totalorder %s1255_s22, %s1251_s21 }
  0x44   : > { %s1507_s3 = scalar_select %p107_p5, %s1259_s23, %s109_s8  }
  0x45   : > { %s1804_s10 = scalar_select %p1498_p13, 1, 0 }
  0x46   : > { %1805 = sst [smem:[#allocation23_spill]] %s1507_s3  ;;  %p1806_p9 = scmp.eq.s32.totalorder %s1291_s6, 0 }
  0x47   : > { %p1517_p8 = por %p122_p4, %p1779_p6  ;;  %p173_p10 = scmp.ne.s32.totalorder %s1247_s20, %s1243_s19 }
  0x48   : > { %p1511_p7 = por %p116_p11, %p1806_p9  ;;  %p174_p12 = scmp.eq.s32.totalorder %s1487_s5, 3 }
  0x49   : > { %s1808_s24 = scalar_select %p1517_p8, 1, 0 }
  0x4a   : > { %p179_p0 = scmp.ne.s32.totalorder %s1243_s19, %s1239_s18  ;;  %p180_p5 = scmp.eq.s32.totalorder %s771_s28, 3 }
  0x4b   : > { %p1526_p1 = por %p174_p12, %p173_p10  ;;  %p772_p3 = scmp.ge.s32.totalorder %s1291_s6, 1 }
  0x4c   : > { %p1531_p2 = por %p180_p5, %p179_p0  ;;  %p187_p11 = scmp.lt.s32.totalorder %s1291_s6, 5 }
  0x4d   : > { %s1809_s21 = scalar_select %p1526_p1, 1, 0 }
  0x4e   : > { %s1810_s11 = scalar_select %p1531_p2, 1, 0 }
  0x4f   : > { %p1536_p4 = pnand %p772_p3, %p187_p11  ;;  %s1296_s13 = smov [#allocation6]  }
  0x50   : > { %s199_s14 = sshll.u32 %s1296_s13, 4  ;;  %p1812_p10 = scmp.lt.s32.totalorder %s1291_s6, 4  ;;  %s1540_s14 = int_to_ptr.vmem [resolvable:$true] %s199_s14 }
  0x51   : > { %s1811_s9 = scalar_select %p1536_p4, 1, 0 }
  0x52   : > { %p883_p9 = pneg %p1536_p4  ;;  %p1548_p12 = pnand %p1812_p10, %p1511_p7 }
  0x53   : > { %s240_s16 = sand.u32 1, %s1259_s23   ;;  %s780_s28 = sshll.u32 %s1283_s29, 6 }
  0x54   : > { %s1813_s15 = scalar_select %p1548_p12, 1, 0 }
  0x55   : > { %p1555_p0 = pnand %p883_p9, %p1779_p6  ;;  %s779_s4 = sshll.u32 %s240_s16, 6 }
  0x56   : > { %s1079_s0 = scalar_lea.hbm %s1765_s1, 2048 }
  0x57   : > { %p1080_p7 = scmp.ne.s32.totalorder %s1765_s1, %s1079_s0  ;;  %p1081_p5 = pneg %p1555_p0 }
  0x58   : > { %p1086_p9 = scmp.lt.u32.totalorder %s1079_s0, %s1765_s1 }
  0x59   : > { %p1082_p3 = pnand %p1081_p5, %p1080_p7 }
  0x5b   : > { %p1083_p11 = pneg %p1082_p3 }
  0x5d   : > { %p1088_p10 = pnand %p1086_p9, %p1083_p11 }
  0x5f   : > { %1091 = shalt.err (!%p1088_p10)
}
  0x60   : > { %s1092_s16 = scalar_lea.vmem %s1540_s14, 2048  ;;  %p1100_p8 = scmp.lt.s32.totalorder %s1540_s14, %s1540_s14 }
  0x61   : > { %p1093_p6 = scmp.ne.s32.totalorder %s1540_s14, %s1092_s16  ;;  %p1101_p13 = scmp.lt.s32.totalorder %s1092_s16, %s1092_s16 }
  0x63   : > { %p1095_p2 = pnand %p1093_p6, %p1081_p5  ;;  %p1102_p4 = por %p1101_p13, %p1100_p8 }
  0x65   : > { %p1096_p1 = pneg %p1095_p2 }
  0x67   : > { %p1103_p12 = pnand %p1102_p4, %p1096_p1 }
  0x69   : > { %1106 = shalt.err (!%p1103_p12)
}
  0x6a   : > { %s1297_s30 = smov 64   ;;  %s1298_s0 = smov 4  }
  0x6b   : > { %886 = dma.hbm_to_vmem [thread:$0]  (!%p1555_p0), %s1765_s1, 2048, %s1540_s14, [#allocation7], %s1297_s30, %s1297_s30, %s1298_s0  }
  0x6c   : > { %s1815_s27 = sld [smem:[#allocation26_spill]]  ;;  %s242_s3 = scalar_lea.vmem [#allocation8], %s779_s4 }
  0x6d   : > { %s248_s23 = sshll.u32 %s242_s3, 4  ;;  %p1817_p13 = scmp.ne.s32.totalorder %s1813_s15, 0  ;;  %s1589_s23 = int_to_ptr.vmem [resolvable:$true] %s248_s23 }
  0x6f   : > { %p1109_p8 = pneg %p1817_p13 }
  0x72   : > { %s1816_s16 = smov %s1815_s27  ;;  %s1587_s29 = scalar_lea.hbm %s1815_s27, %s780_s28 }
  0x73   : > { %s1107_s2 = scalar_lea.hbm %s1587_s29, 1024  ;;  %s1112_s28 = scalar_lea.hbm %s1816_s16, 2048 }
  0x74   : > { %p1108_p6 = scmp.ne.s32.totalorder %s1587_s29, %s1107_s2  ;;  %p1113_p4 = scmp.lt.u32.totalorder %s1587_s29, %s1816_s16 }
  0x75   : > { %p1114_p12 = scmp.lt.u32.totalorder %s1112_s28, %s1107_s2  ;;  %p1116_p7 = scmp.lt.u32.totalorder %s1107_s2, %s1587_s29 }
  0x76   : > { %p1110_p1 = pnand %p1109_p8, %p1108_p6 }
  0x77   : > { %p1115_p0 = por %p1114_p12, %p1113_p4 }
  0x78   : > { %p1111_p2 = pneg %p1110_p1 }
  0x79   : > { %p1117_p5 = por %p1116_p7, %p1115_p0 }
  0x7b   : > { %p1118_p3 = pnand %p1117_p5, %p1111_p2 }
  0x7d   : > { %1121 = shalt.err (!%p1118_p3)
}
  0x7e   : > { %s1122_s3 = scalar_lea.vmem %s1589_s23, 1024  ;;  %s1299_s4 = smov [#allocation8]  }
  0x7f   : > { %p1123_p11 = scmp.ne.s32.totalorder %s1589_s23, %s1122_s3  ;;  %s1127_s13 = sshll.u32 %s1299_s4, 4  ;;  %s1128_s13 = int_to_ptr.vmem [resolvable:$false] %s1127_s13 }
  0x80   : > { %s1129_s27 = scalar_lea.vmem %s1128_s13, 2048  ;;  %p1130_p6 = scmp.lt.s32.totalorder %s1589_s23, %s1128_s13 }
  0x81   : > { %p1125_p9 = pnand %p1123_p11, %p1109_p8  ;;  %p1131_p1 = scmp.lt.s32.totalorder %s1129_s27, %s1122_s3 }
  0x83   : > { %p1126_p10 = pneg %p1125_p9  ;;  %p1132_p4 = por %p1131_p1, %p1130_p6 }
  0x85   : > { %p1133_p12 = pnand %p1132_p4, %p1126_p10 }
  0x87   : > { %1136 = shalt.err (!%p1133_p12)
}
  0x88   : > { %s1300_s2 = smov 128   ;;  %p1818_p8 = scmp.ne.s32.totalorder %s1811_s9, 0 }
  0x89   : > { %893 = dma.hbm_to_vmem [thread:$0]  (!%p1817_p13), %s1587_s29, 1024, %s1589_s23, %s1458_s12, %s1300_s2, %s1297_s30, %s1298_s0  }
  0x8a   : > { %266 = sbr.rel (%p1818_p8) target bundleno = 681 (0x2a9), region = 40  ;;  %s268_s14 = sand.u32 (!%p1818_p8), 1, %s1487_s5  }
  0x8b   : > { %s270_s26 = sand.u32 (!%p1818_p8), 1, %s1267_s25   ;;  %s269_s17 = scalar_lea.sflag (!%p1818_p8), [#allocation4], %s268_s14 }
  0x8c   : > { %s782_s28 = sshll.u32 (!%p1818_p8), %s270_s26, 5  ;;  %p1819_p2 = scmp.ne.s32.totalorder (!%p1818_p8), %s1804_s10, 0 }
  0x8d   : > { %s1623_s8 = scalar_lea.vmem (!%p1818_p8), [#allocation3], %s782_s28 }
  0x91   : > { %1222 = dma.done.wait (%p1819_p2), %s269_s17, 512  }
  0x92   : > { %1224 = vsyncadd (%p1819_p2), %s269_s17, 4294966784  ;;  %p1820_p0 = scmp.eq.s32.totalorder %s1487_s5, 0 }
  0x94   : > { %1226 = dma.done.wait (%p1820_p0), [#allocation7], 2048   ;;  %p1821_p13 = pmov %p1820_p0 }
  0x95   : > { %s283_s23 = sand.u32 1, %s1255_s22   ;;  %p1822_p7 = scmp.ne.s32.totalorder %s1808_s24, 0 }
  0x96   : > { %1228 = vsyncadd (%p1821_p13), [#allocation7], 4294965248  ;;  %s784_s29 = sshll.u32 %s283_s23, 6 }
  0x97   : > { %s1634_s12 = scalar_lea.vmem [#allocation8], %s784_s29 }
  0x98   : > { %1230 = dma.done.wait (%p1822_p7), %s269_s17, 1024  }
  0x99   : > { %1232 = vsyncadd (%p1822_p7), %s269_s17, 4294966272  ;;  %s1823_s10 = sld [smem:[#allocation16_spill]]  ;;  %s317_s9 = sand.u32 1, %s1243_s19  }
  0x9a   : > { %s785_s5 = sshll.u32 %s317_s9, 4  ;;  %s1824_s3 = sld [smem:[#allocation27_spill]] }
  0x9b   : > { %s1651_s13 = scalar_lea.vmem [#allocation9], %s785_s5 }
  0x9f   : > { %p321_p5 = scmp.lt.s32.totalorder %s1823_s10, 1  ;;  %p786_p3 = scmp.ne.s32.totalorder %s1823_s10, 0 }
  0xa0   : > { %v1025_v0 = vld [vmem:[#allocation6 + $0x40] sm:$0xff] (!%p786_p3)   ;;  %v1027_v2 = vld [vmem:[#allocation6 + $0x48] sm:$0xff] (!%p786_p3)   ;;  %v1029_v4 = vld [vmem:[#allocation6 + $0x50] sm:$0xff] (!%p786_p3)   ;;  %s1825_s2 = sld [smem:[#allocation25_spill]] (!%p786_p3) }
  0xa1   : > { %s1645_s15 = scalar_select %p321_p5, %s1823_s10, 1 }
  0xa2   : > { %329 = sbr.rel (%p786_p3) target bundleno = 416 (0x1a0), region = 56  ;;  %v1026_v1 = vld [vmem:[#allocation6] sm:$0xff] (!%p786_p3)   ;;  %822 = vmatprep.subr.bf16.mxu0 (!%p786_p3), %v1025_v0  ;;  %v1028_v3 = vld [vmem:[#allocation6 + $0x8] sm:$0xff] (!%p786_p3)   ;;  %v1030_v5 = vld [vmem:[#allocation6 + $0x10] sm:$0xff] (!%p786_p3)  }
  0xa3   : > { %s323_s4 = scalar_lea.vmem %s1824_s3, %s1645_s15  ;;  %823 = vmatpush3.bf16.msra.mxu0 (!%p786_p3), %v1026_v1  ;;  %v1031_v6 = vld [vmem:[#allocation6 + $0x58] sm:$0xff] (!%p786_p3)   ;;  %v1033_v8 = vld [vmem:[#allocation6 + $0x60] sm:$0xff] (!%p786_p3)   ;;  %v1035_v10 = vld [vmem:[#allocation6 + $0x68] sm:$0xff] (!%p786_p3)  }
  0xa4   : > { %824 = vmatprep.subr.bf16.mxu0 (!%p786_p3), %v1027_v2  ;;  %v1032_v7 = vld [vmem:[#allocation6 + $0x18] sm:$0xff] (!%p786_p3)   ;;  %v1034_v9 = vld [vmem:[#allocation6 + $0x20] sm:$0xff] (!%p786_p3)   ;;  %v331_v11 = vld [vmem:[%s1623_s8 + $0x8] sm:$0xff] (!%p786_p3) }
  0xa5   : > { %v333_v12 = vld [vmem:[%s1623_s8 + $0x18] sm:$0xff] (!%p786_p3)  ;;  %v1036_v14 = vld [vmem:[#allocation6 + $0x28] sm:$0xff] (!%p786_p3)   ;;  %v1037_v15 = vld [vmem:[#allocation6 + $0x70] sm:$0xff] (!%p786_p3)  }
  0xa6   : > { %v335_v13 = vpack.c.bf16 (!%p786_p3), %v333_v12, %v331_v11  ;;  %v1038_v16 = vld [vmem:[#allocation6 + $0x30] sm:$0xff] (!%p786_p3)   ;;  %v1039_v17 = vld [vmem:[#allocation6 + $0x78] sm:$0xff] (!%p786_p3)   ;;  %v330_v19 = vld [vmem:[%s1623_s8] sm:$0xff] (!%p786_p3) }
  0xa7   : > { %825 = vmatpush3.bf16.msra.mxu0 (!%p786_p3), %v1028_v3  ;;  %v1040_v18 = vld [vmem:[#allocation6 + $0x38] sm:$0xff] (!%p786_p3)   ;;  %v332_v20 = vld [vmem:[%s1623_s8 + $0x10] sm:$0xff] (!%p786_p3) }
  0xa8   : > { %826 = vmatprep.subr.bf16.mxu0 (!%p786_p3), %v1029_v4  ;;  %503 = vmatprep.mubr.bf16.mxu0 (!%p786_p3), %v335_v13  ;;  %v334_v21 = vpack.c.bf16 (!%p786_p3), %v332_v20, %v330_v19  ;;  %v787_v26 = vld [vmem:[%s1825_s2] ss:$0 sm:$0xff] (!%p786_p3) }
  0xab   : > { %827 = vmatpush3.bf16.msra.mxu0 %v1030_v5 }
  0xac   : > { %828 = vmatprep.subr.bf16.mxu0 %v1031_v6 }
  0xaf   : > { %829 = vmatpush3.bf16.msra.mxu0 %v1032_v7 }
  0xb0   : > { %830 = vmatprep.subr.bf16.mxu0 %v1033_v8 }
  0xb3   : > { %831 = vmatpush3.bf16.msra.mxu0 %v1034_v9 }
  0xb4   : > { %832 = vmatprep.subr.bf16.mxu0 %v1035_v10 }
  0xb7   : > { %833 = vmatpush3.bf16.msra.mxu0 %v1036_v14 }
  0xb8   : > { %834 = vmatprep.subr.bf16.mxu0 %v1037_v15 }
  0xbb   : > { %835 = vmatpush3.bf16.msra.mxu0 %v1038_v16 }
  0xbc   : > { %836 = vmatprep.subr.bf16.mxu0 %v1039_v17 }
  0xbf   : > { %837 = vmatpush3.bf16.msra.mxu0 %v1040_v18 }
  0xc2   : > { %504 = vmatmul.mubr.bf16.vlgmr.msra.gmra.mrb[0].mxu0 %v334_v21 }
 0x195   : > { %v838_v22 = vpop.f32.mrb[0].mxu0 }
 0x196   : > { %v839_v23 = vpop.f32.mrb[1].mxu0 }
 0x197   : > { %v840_v24 = vadd.f32 %v839_v23, %v838_v22  ;;  %v841_v25 = vpop.f32.mrb[2].mxu0 }
 0x198   : > { %v842_v27 = vpop.f32.mrb[3].mxu0 }
 0x199   : > { %v843_v28 = vadd.f32 %v842_v27, %v841_v25  ;;  %v506_v29 = vadd.f32 %v840_v24, %v787_v26 }
 0x19b   : > { %v509_v30 = vadd.f32 %v843_v28, %v787_v26 }
 0x19d   : > { %v512_v31 = vpack.c.bf16 %v509_v30, %v506_v29 }
 0x19f   : > { %513 = vst [vmem:[#allocation2] sm:$0xff] %v512_v31 }
 0x1a0 PF: > { %v1041_v32 = vld [vmem:[%s1634_s12] sm:$0xff]   ;;  %v1301_v33 = vmov 0.0   ;;  %v1042_v34 = vld [vmem:[%s1634_s12 + $0x8] sm:$0xff]   ;;  %vm1302_vm0 = vmmov 0   ;;  %v1043_v35 = vld [vmem:[%s1634_s12 + $0x10] sm:$0xff]   ;;  %s1826_s14 = sld [smem:[#allocation17_spill]] }
 0x1a1   : > { %853 = vmatprep.subr.bf16.mxu0 %v1301_v33  ;;  %869 = vmatprep.mubr.msk.bf16.mxu0 %vm1302_vm0, %v1301_v33  ;;  %v1044_v36 = vld [vmem:[%s1634_s12 + $0x18] sm:$0xff]   ;;  %s1827_s26 = sld [smem:[#allocation16_spill]]  ;;  %v1045_v37 = vld [vmem:[%s1634_s12 + $0x20] sm:$0xff]   ;;  %v1046_v38 = vld [vmem:[%s1634_s12 + $0x28] sm:$0xff]   ;;  %s645_s5 = sshll.u32 %s1651_s13, 4  ;;  %s1682_s5 = int_to_ptr.vmem [resolvable:$true] %s645_s5 }
 0x1a2   : > { %854 = vmatpush3.bf16.msra.mxu0 %v1041_v32  ;;  %v1047_v39 = vld [vmem:[%s1634_s12 + $0x30] sm:$0xff]   ;;  %v1048_v40 = vld [vmem:[%s1634_s12 + $0x38] sm:$0xff]   ;;  %s1829_s0 = sld [smem:[#allocation28_spill]]  ;;  %s1688_s15 = scalar_lea.sflag [#allocation5], %s317_s9 }
 0x1a3   : > { %855 = vmatprep.subr.bf16.mxu0 %v1301_v33  ;;  %v804_v42 = vld [vmem:[%s323_s4] ss:$0 sm:$0xff]  ;;  %s1137_s4 = scalar_lea.vmem %s1682_s5, 256  ;;  %p1830_p9 = scmp.ne.s32.totalorder %s1809_s21, 0 }
 0x1a4   : > { %p1138_p11 = scmp.ne.s32.totalorder %s1682_s5, %s1137_s4  ;;  %s1303_s24 = smov [#allocation9]  }
 0x1a5   : > { %s1141_s27 = sshll.u32 %s1303_s24, 4  ;;  %s1142_s27 = int_to_ptr.vmem [resolvable:$false] %s1141_s27 }
 0x1a6   : > { %856 = vmatpush3.bf16.msra.mxu0 %v1042_v34  ;;  %v514_v41 = vld [vmem:[#allocation2] sm:$0xff]  ;;  %s821_s28 = sshll.u32 %s1826_s14, 2  ;;  %p1139_p10 = pnand %p1138_p11, %p1830_p9 }
 0x1a7   : > { %857 = vmatprep.subr.bf16.mxu0 %v1301_v33  ;;  %s642_s17 = sadd.s32 %s1827_s26, %s821_s28  ;;  %s1143_s2 = scalar_lea.vmem %s1142_s27, 512 }
 0x1a8   : > { %s816_s10 = sshll.u32 %s642_s17, 7  ;;  %p1140_p6 = pneg %p1139_p10 }
 0x1a9   : > { %s1680_s3 = scalar_lea.hbm %s1829_s0, %s816_s10  ;;  %p1144_p1 = scmp.lt.s32.totalorder %s1682_s5, %s1142_s27 }
 0x1aa   : > { %858 = vmatpush3.bf16.msra.mxu0 %v1043_v35  ;;  %p1145_p4 = scmp.lt.s32.totalorder %s1143_s2, %s1137_s4 }
 0x1ab   : > { %859 = vmatprep.subr.bf16.mxu0 %v1301_v33 }
 0x1ac   : > { %p1146_p12 = por %p1145_p4, %p1144_p1 }
 0x1ae   : > { %860 = vmatpush3.bf16.msra.mxu0 %v1044_v36  ;;  %p1147_p8 = pnand %p1146_p12, %p1140_p6 }
 0x1af   : > { %861 = vmatprep.subr.bf16.mxu0 %v1301_v33 }
 0x1b2   : > { %862 = vmatpush3.bf16.msra.mxu0 %v1045_v37 }
 0x1b3   : > { %863 = vmatprep.subr.bf16.mxu0 %v1301_v33 }
 0x1b6   : > { %864 = vmatpush3.bf16.msra.mxu0 %v1046_v38 }
 0x1b7   : > { %865 = vmatprep.subr.bf16.mxu0 %v1301_v33 }
 0x1ba   : > { %866 = vmatpush3.bf16.msra.mxu0 %v1047_v39 }
 0x1bb   : > { %867 = vmatprep.subr.bf16.mxu0 %v1301_v33 }
 0x1be   : > { %868 = vmatpush3.bf16.msra.mxu0 %v1048_v40 }
 0x1c1   : > { %870 = vmatmul.mubr.bf16.vlgmr.msra.gmra.mrb[0].mxu0 %v514_v41 }
 0x294   : > { %v620_v43 = vpop.f32.mrb[0].mxu0 }
 0x295   : > { %v621_v44 = vadd.f32 %v804_v42, %v620_v43  ;;  %v871_v45 = vpop.f32.mrb[1].mxu0 }
 0x296   : > { %v623_v46 = vpop.f32.mrb[2].mxu0 }
 0x297   : > { %627 = vst [vmem:[%s1651_s13] sm:$0xff] %v621_v44  ;;  %v624_v47 = vadd.f32 %v804_v42, %v623_v46  ;;  %v872_v48 = vpop.f32.mrb[3].mxu0 }
 0x299   : > { %628 = vst [vmem:[%s1651_s13 + $0x8] sm:$0xff] %v624_v47 }
 0x29a   : > { %1150 = shalt.err (!%p1147_p8)
}
 0x29b   : > { %s1151_s9 = scalar_lea.hbm %s1680_s3, 256  ;;  %s1155_s26 = scalar_lea.hbm %s1829_s0, 1024 }
 0x29c   : > { %p1152_p2 = scmp.ne.s32.totalorder %s1680_s3, %s1151_s9  ;;  %p1156_p7 = scmp.lt.u32.totalorder %s1680_s3, %s1829_s0 }
 0x29d   : > { %p1157_p5 = scmp.lt.u32.totalorder %s1155_s26, %s1151_s9  ;;  %p1159_p11 = scmp.lt.u32.totalorder %s1151_s9, %s1680_s3 }
 0x29e   : > { %p1153_p0 = pnand %p1152_p2, %p1830_p9 }
 0x29f   : > { %p1158_p3 = por %p1157_p5, %p1156_p7 }
 0x2a0   : > { %p1154_p13 = pneg %p1153_p0 }
 0x2a1   : > { %p1160_p10 = por %p1159_p11, %p1158_p3 }
 0x2a3   : > { %p1161_p6 = pnand %p1160_p10, %p1154_p13 }
 0x2a5   : > { %1164 = shalt.err (!%p1161_p6)
}
 0x2a6   : > { %s1304_s8 = smov 128   ;;  %s1305_s23 = smov 256  }
 0x2a7   : > { %s1306_s29 = smov 8  }
 0x2a8   : > { %881 = dma.vmem_to_hbm [thread:$0]  (%p1830_p9), %s1682_s5, 256, %s1680_s3, %s1688_s15, %s1304_s8, %s1305_s23, %s1306_s29  }
 0x2a9 PF: > { %p901_p1 = scmp.ge.s32.totalorder %s1291_s6, 2  ;;  %s660_s10 = sand.u32 1, %s1239_s18  }
 0x2aa   : > { %p1831_p4 = scmp.ne.s32.totalorder %s1810_s11, 0  ;;  %s661_s12 = scalar_lea.sflag [#allocation5], %s660_s10 }
 0x2ac   : > { %p895_p12 = pnand %p901_p1, %p1831_p4 }
 0x2ae   : > { %1234 = dma.done.wait (!%p895_p12), %s661_s12, 256  }
 0x2af   : > { %1236 = vsyncadd (!%p895_p12), %s661_s12, 4294967040  ;;  %s22_s6 = sadd.s32 1, %s1291_s6   ;;  %s1833_s5 = sld [smem:[#allocation14_spill]] }
 0x2b0   : > { %p1717_p8 = scmp.ge.s32.totalorder %s22_s6, 6   ;;  %s1834_s23 = sld [smem:[#allocation23_spill]] }
 0x2b1   : > { %s1835_s3 = sld [smem:[#allocation15_spill]]  ;;  %s1836_s26 = sld [smem:[#allocation22_spill]] }
 0x2b2   : > { %s1837_s27 = sld [smem:[#allocation18_spill]]  ;;  %s1838_s28 = sld [smem:[#allocation19_spill]] }
 0x2b3   : > { %s1839_s29 = sld [smem:[#allocation20_spill]]  ;;  %s1840_s11 = sld [smem:[#allocation21_spill]] }
 0x2b4   : > { %s1842_s18 = smov %s1243_s19  ;;  %s1843_s19 = smov %s1247_s20 }
 0x2b5   : > { %s1844_s20 = smov %s1440_s7  ;;  %s1845_s21 = smov %s1255_s22 }
 0x2b6   : > { %s1846_s22 = smov %s1833_s5  ;;  %s1847_s24 = smov %s1267_s25 }
 0x2b7   : > { %s1848_s25 = smov %s1835_s3  ;;  %21 = sbr.rel (!%p1717_p8) target bundleno = 17 (0x11), region = 107 }
 0x2b9   : > { %s1849_s30 = smov %s1840_s11 }
 0x2be   :  { %666 = vsyncpa [#allocation4], 1 }
 0x2bf   :  { %668 = vsyncpa [#allocation4 + $0x1], 1 }
 0x2c0   :  { %669 = vsyncpa [#allocation7], 1 }
 0x2c1   :  { %670 = vsyncpa [#allocation5], 1 }
 0x2c2   :  { %672 = vsyncpa [#allocation5 + $0x1], 1 }

</bundles_post_ra>
